<compile_context>
chip_gen: v5e
topology: v5e:2x2
jax: 0.10.0
libtpu: 0.0.40
codegen_flags: <defaults>
</compile_context>

<pallas_src>
import functools

import jax
import jax.numpy as jnp
import numpy as np
from jax import lax
from jax.experimental import pallas as pl
from jax.experimental.pallas import tpu as pltpu

NEG_SLOPE = 0.2    # GATConv default LeakyReLU negative_slope
NEG_INF = -1e30    # finite stand-in for float('-inf') mask fill (avoids NaN rows)


def _gat_layer(x, mask_bias, w, params, *, apply_relu, use_bf16):
    """One dense single-head GATConv layer on in-VMEM values.

    params rows: 0 = att_src, 1 = att_dst, 2 = bias   (shape [3, C_out]).
    mask_bias:   [N, N] f32, 0 where edge exists, NEG_INF elsewhere.
    """
    att_src = params[0:1, :]                     # [1, C]
    att_dst = params[1:2, :]                     # [1, C]
    bias = params[2:3, :]                        # [1, C]

    md = jnp.bfloat16 if use_bf16 else jnp.float32

    # Linear projection: h = x @ W  (bf16 MXU inputs, f32 accumulation; all
    # elementwise/softmax math below stays f32 — required on v5e, fine elsewhere).
    h = jnp.dot(x.astype(md), w.astype(md),
                preferred_element_type=jnp.float32)                  # [N, C]

    # Attention logits. Both projections are produced directly in the
    # orientation they're consumed in, on the MXU (contract last-vs-last):
    #   src term -> [1, N] row, dst term -> [N, 1] column.
    # No VPU multiply / XLU cross-lane reduce and no [N,1]<->[1,N] transpose.
    a_src_row = lax.dot_general(att_src, h, (((1,), (1,)), ((), ())),
                                preferred_element_type=jnp.float32)  # [1, N]
    a_dst_col = lax.dot_general(h, att_dst, (((1,), (1,)), ((), ())),
                                preferred_element_type=jnp.float32)  # [N, 1]

    e = a_dst_col + a_src_row                                        # [N, N]
    e = jnp.where(e >= 0, e, NEG_SLOPE * e)                          # LeakyReLU
    e = e + mask_bias                                                # additive mask

    # Row softmax over source nodes j; reciprocal goes to the EUP slot (free).
    e = e - jnp.max(e, axis=-1, keepdims=True)
    p = jnp.exp(e)
    alpha = p * pl.reciprocal(jnp.sum(p, axis=-1, keepdims=True), approx=True)

    # Neighbor aggregation on the MXU (bf16 in / f32 acc) + bias.
    out = jnp.dot(alpha.astype(md), h.astype(md),
                  preferred_element_type=jnp.float32) + bias
    if apply_relu:
        out = jnp.maximum(out, 0.0)
    return out


def _gat2_kernel(x_ref, adj_ref, w1_ref, p1_ref, w2_ref, p2_ref, out_ref, *,
                 use_bf16):
    # adj tile for this graph arrives as f32; turn it into an additive mask
    # bias ONCE and reuse it for both layers (no wrapper-side conversion).
    # NOTE: rows with zero edges get uniform attention over all nodes after
    # max-subtraction — callers must provide self-loops (as the demo does).
    mask_bias = jnp.where(adj_ref[0] != 0.0, 0.0, NEG_INF)           # [N, N]

    # Layer 1 (+ fused ReLU). h1 stays resident in VMEM/vregs — never written
    # back to HBM between the two layers.
    h1 = _gat_layer(x_ref[0], mask_bias, w1_ref[...], p1_ref[...],
                    apply_relu=True, use_bf16=use_bf16)
    # Layer 2.
    out_ref[0] = _gat_layer(h1, mask_bias, w2_ref[...], p2_ref[...],
                            apply_relu=False, use_bf16=use_bf16)


def pack_gat_params(params):
    """One-time packing of small per-layer params into [3, C] arrays.

    Done OUTSIDE the per-call / jitted path so the forward issues no extra
    XLA ops or HBM round trips for parameter repacking.
    """
    p1 = jnp.concatenate(
        [params["att_src1"], params["att_dst1"], params["b1"]], axis=0)
    p2 = jnp.concatenate(
        [params["att_src2"], params["att_dst2"], params["b2"]], axis=0)
    return {"w1": params["w1"], "p1": p1, "w2": params["w2"], "p2": p2}


def gat_forward(x, adj, packed, *, use_bf16=True):
    """Fused 2-layer dense GAT forward over a batch of B graphs.

    x: [B, N, F] float32, adj: [B, N, N] float32 (nonzero = edge j->i).
    packed: output of pack_gat_params().

    TODO(synk): F.dropout(p=0.5) is the identity in eval mode (training=False);
    stochastic training-time dropout is not implemented.
    TODO(synk): for large graphs (N >~ 1k, earlier on v7x's 64 MiB VMEM)
    replace the dense-in-VMEM body with a destination-row-tiled grid +
    online-softmax accumulator (flash style, src axis last & "arbitrary",
    >=512-row tiles), and pad/pack heads so the lane (feature) axis is
    ~128-dense for lane-dense output stores.
    """
    b, n, f = x.shape
    c_hid = packed["w1"].shape[1]
    c_out = packed["w2"].shape[1]

    kernel = functools.partial(_gat2_kernel, use_bf16=use_bf16)
    return pl.pallas_call(
        kernel,
        out_shape=jax.ShapeDtypeStruct((b, n, c_out), jnp.float32),
        grid=(b,),
        in_specs=[
            pl.BlockSpec((1, n, f), lambda i: (i, 0, 0)),          # x[b]
            pl.BlockSpec((1, n, n), lambda i: (i, 0, 0)),          # adj[b]
            pl.BlockSpec((f, c_hid), lambda i: (0, 0)),            # w1 (resident)
            pl.BlockSpec((3, c_hid), lambda i: (0, 0)),            # p1 (resident)
            pl.BlockSpec((c_hid, c_out), lambda i: (0, 0)),        # w2 (resident)
            pl.BlockSpec((3, c_out), lambda i: (0, 0)),            # p2 (resident)
        ],
        out_specs=pl.BlockSpec((1, n, c_out), lambda i: (i, 0, 0)),
        compiler_params=pltpu.CompilerParams(
            dimension_semantics=("parallel",)),                    # v7x: 2 TCs
    )(x, adj, packed["w1"], packed["p1"], packed["w2"], packed["p2"])


# ---------------- pure-JAX reference for a sanity check ----------------
# Mirrors the kernel's bf16-at-the-MXU numerics (f32 accumulation) but uses an
# exact softmax divide; the test tolerance absorbs the EUP approx reciprocal.
def _gat_layer_ref(x, adj, w, a_src, a_dst, b, apply_relu, use_bf16):
    md = jnp.bfloat16 if use_bf16 else jnp.float32
    h = jnp.dot(x.astype(md), w.astype(md), preferred_element_type=jnp.float32)
    asrc = jnp.sum(h * a_src, axis=-1)
    adst = jnp.sum(h * a_dst, axis=-1)
    e = adst[:, None] + asrc[None, :]
    e = jnp.where(e >= 0, e, NEG_SLOPE * e)
    e = jnp.where(adj != 0, e, NEG_INF)
    alpha = jax.nn.softmax(e, axis=-1)
    out = jnp.dot(alpha.astype(md), h.astype(md),
                  preferred_element_type=jnp.float32) + b
    return jnp.maximum(out, 0.0) if apply_relu else out


def _gat_forward_ref(x, adj, p, use_bf16=True):
    def one(xg, ag):
        h = _gat_layer_ref(xg, ag, p["w1"], p["att_src1"], p["att_dst1"],
                           p["b1"], True, use_bf16)
        return _gat_layer_ref(h, ag, p["w2"], p["att_src2"], p["att_dst2"],
                              p["b2"], False, use_bf16)
    return jax.vmap(one)(x, adj)


if __name__ == "__main__":
    B = 4             # batch of independent graphs (amortizes launch overhead)
    N = 32            # number of nodes per graph
    C_IN = 16         # in_channels
    C_HID = 32        # hidden_channels
    C_OUT = 8         # out_channels

    key = jax.random.PRNGKey(0)
    kx, kadj, k1, k2, k3, k4, k5, k6 = jax.random.split(key, 8)

    # Node features and dense adjacency (self-loops so no empty rows).
    x = jax.random.normal(kx, (B, N, C_IN), dtype=jnp.float32)
    adj = (jax.random.uniform(kadj, (B, N, N)) < 0.3).astype(jnp.float32)
    adj = jnp.maximum(adj, jnp.eye(N, dtype=jnp.float32)[None, :, :])

    # Deterministic parameter init (GATConv: lin weight, att_src, att_dst, bias).
    scale1 = 1.0 / np.sqrt(C_IN)
    scale2 = 1.0 / np.sqrt(C_HID)
    params = {
        "w1": jax.random.normal(k1, (C_IN, C_HID), jnp.float32) * scale1,
        "att_src1": jax.random.normal(k2, (1, C_HID), jnp.float32) * scale2,
        "att_dst1": jax.random.normal(k3, (1, C_HID), jnp.float32) * scale2,
        "b1": jnp.zeros((1, C_HID), jnp.float32),
        "w2": jax.random.normal(k4, (C_HID, C_OUT), jnp.float32) * scale2,
        "att_src2": jax.random.normal(k5, (1, C_OUT), jnp.float32) / np.sqrt(C_OUT),
        "att_dst2": jax.random.normal(k6, (1, C_OUT), jnp.float32) / np.sqrt(C_OUT),
        "b2": jnp.zeros((1, C_OUT), jnp.float32),
    }

    # One-time packing, outside the jitted per-call path.
    packed = pack_gat_params(params)
    packed = jax.tree_util.tree_map(jax.block_until_ready, packed)

    out = jax.jit(gat_forward)(x, adj, packed)
    out = jax.block_until_ready(out)

    # Tolerance covers the EUP approx reciprocal in the softmax and MXU vs XLA
    # accumulation-order differences with bf16 matmul inputs.
    ref = _gat_forward_ref(x, adj, params)
    np.testing.assert_allclose(np.asarray(out), np.asarray(ref),
                               rtol=1e-2, atol=1e-2)
    print("KERNEL_OK")
</pallas_src>

<mosaic_0001>
module attributes {stable_mosaic.version = 11 : i64} {
  func.func @_gat2_kernel(%arg0: i32, %arg1: memref<1x32x16xf32, #tpu.memory_space<vmem>>, %arg2: memref<1x32x32xf32, #tpu.memory_space<vmem>>, %arg3: memref<16x32xf32, #tpu.memory_space<vmem>>, %arg4: memref<3x32xf32, #tpu.memory_space<vmem>>, %arg5: memref<32x8xf32, #tpu.memory_space<vmem>>, %arg6: memref<3x8xf32, #tpu.memory_space<vmem>>, %arg7: memref<1x32x8xf32, #tpu.memory_space<vmem>>) attributes {dimension_semantics = [#tpu.dimension_semantics<parallel>], iteration_bounds = array<i64: 4>, scalar_prefetch = 0 : i64, scratch_operands = 0 : i64, tpu.core_type = #tpu.core_type<tc>, window_params = [{transform_indices = @transform_0, window_bounds = array<i64: 1, 32, 16>}, {transform_indices = @transform_1, window_bounds = array<i64: 1, 32, 32>}, {pipeline_mode = #tpu.pipeline_mode<synchronous>, transform_indices = @transform_2, window_bounds = array<i64: 16, 32>}, {pipeline_mode = #tpu.pipeline_mode<synchronous>, transform_indices = @transform_3, window_bounds = array<i64: 3, 32>}, {pipeline_mode = #tpu.pipeline_mode<synchronous>, transform_indices = @transform_4, window_bounds = array<i64: 32, 8>}, {pipeline_mode = #tpu.pipeline_mode<synchronous>, transform_indices = @transform_5, window_bounds = array<i64: 3, 8>}, {transform_indices = @transform_6, window_bounds = array<i64: 1, 32, 8>}]} {
    %c0 = arith.constant 0 : index
    %c0_0 = arith.constant 0 : index
    %c0_1 = arith.constant 0 : index
    %0 = vector.load %arg2[%c0, %c0_0, %c0_1] : memref<1x32x32xf32, #tpu.memory_space<vmem>>, vector<1x32x32xf32>
    %1 = vector.shape_cast %0 : vector<1x32x32xf32> to vector<32x32xf32>
    %cst = arith.constant 0.000000e+00 : f32
    %2 = vector.broadcast %cst : f32 to vector<32x32xf32>
    %3 = arith.cmpf one, %1, %2 : vector<32x32xf32>
    %cst_2 = arith.constant 0.000000e+00 : f32
    %cst_3 = arith.constant -1.000000e+30 : f32
    %4 = vector.broadcast %cst_2 : f32 to vector<32x32xf32>
    %5 = vector.broadcast %cst_3 : f32 to vector<32x32xf32>
    %6 = arith.select %3, %4, %5 : vector<32x32xi1>, vector<32x32xf32>
    %c0_4 = arith.constant 0 : index
    %c0_5 = arith.constant 0 : index
    %c0_6 = arith.constant 0 : index
    %7 = vector.load %arg1[%c0_4, %c0_5, %c0_6] : memref<1x32x16xf32, #tpu.memory_space<vmem>>, vector<1x32x16xf32>
    %8 = vector.shape_cast %7 : vector<1x32x16xf32> to vector<32x16xf32>
    %c0_7 = arith.constant 0 : index
    %c0_8 = arith.constant 0 : index
    %9 = vector.load %arg3[%c0_7, %c0_8] : memref<16x32xf32, #tpu.memory_space<vmem>>, vector<16x32xf32>
    %c0_9 = arith.constant 0 : index
    %c0_10 = arith.constant 0 : index
    %10 = vector.load %arg4[%c0_9, %c0_10] : memref<3x32xf32, #tpu.memory_space<vmem>>, vector<3x32xf32>
    %11 = vector.extract_strided_slice %10 {offsets = [0, 0], sizes = [1, 32], strides = [1, 1]} : vector<3x32xf32> to vector<1x32xf32>
    %12 = vector.extract_strided_slice %10 {offsets = [1, 0], sizes = [1, 32], strides = [1, 1]} : vector<3x32xf32> to vector<1x32xf32>
    %13 = vector.extract_strided_slice %10 {offsets = [2, 0], sizes = [1, 32], strides = [1, 1]} : vector<3x32xf32> to vector<1x32xf32>
    %14 = arith.truncf %8 : vector<32x16xf32> to vector<32x16xbf16>
    %15 = arith.truncf %9 : vector<16x32xf32> to vector<16x32xbf16>
    %cst_11 = arith.constant dense<0.000000e+00> : vector<32x32xf32>
    %16 = tpu.matmul %14, %15, %cst_11 {dimension_numbers = #tpu.dot_dimension_numbers<[1], [0], [0], [1], [0, 0, 1, 1], [], []>} : vector<32x16xbf16>, vector<16x32xbf16>, vector<32x32xf32> -> vector<32x32xf32>
    %cst_12 = arith.constant dense<0.000000e+00> : vector<1x32xf32>
    %17 = tpu.matmul %11, %16, %cst_12 {dimension_numbers = #tpu.dot_dimension_numbers<[1], [1], [0], [0], [0, 0, 1, 0], [], []>} : vector<1x32xf32>, vector<32x32xf32>, vector<1x32xf32> -> vector<1x32xf32>
    %cst_13 = arith.constant dense<0.000000e+00> : vector<32x1xf32>
    %18 = tpu.matmul %16, %12, %cst_13 {dimension_numbers = #tpu.dot_dimension_numbers<[1], [1], [0], [0], [0, 0, 1, 0], [], []>} : vector<32x32xf32>, vector<1x32xf32>, vector<32x1xf32> -> vector<32x1xf32>
    %19 = vector.broadcast %18 : vector<32x1xf32> to vector<32x32xf32>
    %20 = vector.broadcast %17 : vector<1x32xf32> to vector<32x32xf32>
    %21 = arith.addf %19, %20 : vector<32x32xf32>
    %cst_14 = arith.constant 0.000000e+00 : f32
    %22 = vector.broadcast %cst_14 : f32 to vector<32x32xf32>
    %23 = arith.cmpf oge, %21, %22 : vector<32x32xf32>
    %cst_15 = arith.constant 2.000000e-01 : f32
    %24 = vector.broadcast %cst_15 : f32 to vector<32x32xf32>
    %25 = arith.mulf %24, %21 : vector<32x32xf32>
    %26 = arith.select %23, %21, %25 : vector<32x32xi1>, vector<32x32xf32>
    %27 = arith.addf %26, %6 : vector<32x32xf32>
    %cst_16 = arith.constant dense<0xFF800000> : vector<32xf32>
    %28 = vector.multi_reduction <maximumf>, %27, %cst_16 [1] : vector<32x32xf32> to vector<32xf32>
    %29 = vector.shape_cast %28 : vector<32xf32> to vector<32x1xf32>
    %30 = vector.broadcast %29 : vector<32x1xf32> to vector<32x32xf32>
    %31 = arith.subf %27, %30 : vector<32x32xf32>
    %32 = math.exp %31 : vector<32x32xf32>
    %cst_17 = arith.constant dense<0.000000e+00> : vector<32xf32>
    %33 = vector.multi_reduction <add>, %32, %cst_17 [1] : vector<32x32xf32> to vector<32xf32>
    %34 = vector.shape_cast %33 : vector<32xf32> to vector<32x1xf32>
    %35 = tpu.reciprocal %34 {approx = true} : vector<32x1xf32> -> vector<32x1xf32>
    %36 = vector.broadcast %35 : vector<32x1xf32> to vector<32x32xf32>
    %37 = arith.mulf %32, %36 : vector<32x32xf32>
    %38 = arith.truncf %37 : vector<32x32xf32> to vector<32x32xbf16>
    %39 = arith.truncf %16 : vector<32x32xf32> to vector<32x32xbf16>
    %cst_18 = arith.constant dense<0.000000e+00> : vector<32x32xf32>
    %40 = tpu.matmul %38, %39, %cst_18 {dimension_numbers = #tpu.dot_dimension_numbers<[1], [0], [0], [1], [0, 0, 1, 1], [], []>} : vector<32x32xbf16>, vector<32x32xbf16>, vector<32x32xf32> -> vector<32x32xf32>
    %41 = vector.broadcast %13 : vector<1x32xf32> to vector<32x32xf32>
    %42 = arith.addf %40, %41 : vector<32x32xf32>
    %cst_19 = arith.constant 0.000000e+00 : f32
    %43 = vector.broadcast %cst_19 : f32 to vector<32x32xf32>
    %44 = arith.maximumf %42, %43 : vector<32x32xf32>
    %c0_20 = arith.constant 0 : index
    %c0_21 = arith.constant 0 : index
    %45 = vector.load %arg5[%c0_20, %c0_21] : memref<32x8xf32, #tpu.memory_space<vmem>>, vector<32x8xf32>
    %c0_22 = arith.constant 0 : index
    %c0_23 = arith.constant 0 : index
    %46 = vector.load %arg6[%c0_22, %c0_23] : memref<3x8xf32, #tpu.memory_space<vmem>>, vector<3x8xf32>
    %47 = vector.extract_strided_slice %46 {offsets = [0, 0], sizes = [1, 8], strides = [1, 1]} : vector<3x8xf32> to vector<1x8xf32>
    %48 = vector.extract_strided_slice %46 {offsets = [1, 0], sizes = [1, 8], strides = [1, 1]} : vector<3x8xf32> to vector<1x8xf32>
    %49 = vector.extract_strided_slice %46 {offsets = [2, 0], sizes = [1, 8], strides = [1, 1]} : vector<3x8xf32> to vector<1x8xf32>
    %50 = arith.truncf %44 : vector<32x32xf32> to vector<32x32xbf16>
    %51 = arith.truncf %45 : vector<32x8xf32> to vector<32x8xbf16>
    %cst_24 = arith.constant dense<0.000000e+00> : vector<32x8xf32>
    %52 = tpu.matmul %50, %51, %cst_24 {dimension_numbers = #tpu.dot_dimension_numbers<[1], [0], [0], [1], [0, 0, 1, 1], [], []>} : vector<32x32xbf16>, vector<32x8xbf16>, vector<32x8xf32> -> vector<32x8xf32>
    %cst_25 = arith.constant dense<0.000000e+00> : vector<1x32xf32>
    %53 = tpu.matmul %47, %52, %cst_25 {dimension_numbers = #tpu.dot_dimension_numbers<[1], [1], [0], [0], [0, 0, 1, 0], [], []>} : vector<1x8xf32>, vector<32x8xf32>, vector<1x32xf32> -> vector<1x32xf32>
    %cst_26 = arith.constant dense<0.000000e+00> : vector<32x1xf32>
    %54 = tpu.matmul %52, %48, %cst_26 {dimension_numbers = #tpu.dot_dimension_numbers<[1], [1], [0], [0], [0, 0, 1, 0], [], []>} : vector<32x8xf32>, vector<1x8xf32>, vector<32x1xf32> -> vector<32x1xf32>
    %55 = vector.broadcast %54 : vector<32x1xf32> to vector<32x32xf32>
    %56 = vector.broadcast %53 : vector<1x32xf32> to vector<32x32xf32>
    %57 = arith.addf %55, %56 : vector<32x32xf32>
    %cst_27 = arith.constant 0.000000e+00 : f32
    %58 = vector.broadcast %cst_27 : f32 to vector<32x32xf32>
    %59 = arith.cmpf oge, %57, %58 : vector<32x32xf32>
    %cst_28 = arith.constant 2.000000e-01 : f32
    %60 = vector.broadcast %cst_28 : f32 to vector<32x32xf32>
    %61 = arith.mulf %60, %57 : vector<32x32xf32>
    %62 = arith.select %59, %57, %61 : vector<32x32xi1>, vector<32x32xf32>
    %63 = arith.addf %62, %6 : vector<32x32xf32>
    %cst_29 = arith.constant dense<0xFF800000> : vector<32xf32>
    %64 = vector.multi_reduction <maximumf>, %63, %cst_29 [1] : vector<32x32xf32> to vector<32xf32>
    %65 = vector.shape_cast %64 : vector<32xf32> to vector<32x1xf32>
    %66 = vector.broadcast %65 : vector<32x1xf32> to vector<32x32xf32>
    %67 = arith.subf %63, %66 : vector<32x32xf32>
    %68 = math.exp %67 : vector<32x32xf32>
    %cst_30 = arith.constant dense<0.000000e+00> : vector<32xf32>
    %69 = vector.multi_reduction <add>, %68, %cst_30 [1] : vector<32x32xf32> to vector<32xf32>
    %70 = vector.shape_cast %69 : vector<32xf32> to vector<32x1xf32>
    %71 = tpu.reciprocal %70 {approx = true} : vector<32x1xf32> -> vector<32x1xf32>
    %72 = vector.broadcast %71 : vector<32x1xf32> to vector<32x32xf32>
    %73 = arith.mulf %68, %72 : vector<32x32xf32>
    %74 = arith.truncf %73 : vector<32x32xf32> to vector<32x32xbf16>
    %75 = arith.truncf %52 : vector<32x8xf32> to vector<32x8xbf16>
    %cst_31 = arith.constant dense<0.000000e+00> : vector<32x8xf32>
    %76 = tpu.matmul %74, %75, %cst_31 {dimension_numbers = #tpu.dot_dimension_numbers<[1], [0], [0], [1], [0, 0, 1, 1], [], []>} : vector<32x32xbf16>, vector<32x8xbf16>, vector<32x8xf32> -> vector<32x8xf32>
    %77 = vector.broadcast %49 : vector<1x8xf32> to vector<32x8xf32>
    %78 = arith.addf %76, %77 : vector<32x8xf32>
    %c0_32 = arith.constant 0 : index
    %c0_33 = arith.constant 0 : index
    %c0_34 = arith.constant 0 : index
    %79 = vector.load %arg7[%c0_32, %c0_33, %c0_34] : memref<1x32x8xf32, #tpu.memory_space<vmem>>, vector<1x32x8xf32>
    %80 = vector.shape_cast %79 : vector<1x32x8xf32> to vector<32x8xf32>
    %81 = vector.shape_cast %78 : vector<32x8xf32> to vector<1x32x8xf32>
    tpu.vector_store %arg7[%c0_32, %c0_33, %c0_34], %81 {strides = array<i32>} : memref<1x32x8xf32, #tpu.memory_space<vmem>>, vector<1x32x8xf32>,
    return
  }
  func.func @transform_0(%arg0: i32) -> (i32, i32, i32) {
    %c0_i32 = arith.constant 0 : i32
    %c0_i32_0 = arith.constant 0 : i32
    %c0_i32_1 = arith.constant 0 : i32
    return %arg0, %c0_i32, %c0_i32_0 : i32, i32, i32
  }
  func.func @transform_1(%arg0: i32) -> (i32, i32, i32) {
    %c0_i32 = arith.constant 0 : i32
    %c0_i32_0 = arith.constant 0 : i32
    %c0_i32_1 = arith.constant 0 : i32
    return %arg0, %c0_i32, %c0_i32_0 : i32, i32, i32
  }
  func.func @transform_2(%arg0: i32) -> (i32, i32) {
    %c0_i32 = arith.constant 0 : i32
    %c0_i32_0 = arith.constant 0 : i32
    %c0_i32_1 = arith.constant 0 : i32
    return %c0_i32, %c0_i32_0 : i32, i32
  }
  func.func @transform_3(%arg0: i32) -> (i32, i32) {
    %c0_i32 = arith.constant 0 : i32
    %c0_i32_0 = arith.constant 0 : i32
    %c0_i32_1 = arith.constant 0 : i32
    return %c0_i32, %c0_i32_0 : i32, i32
  }
  func.func @transform_4(%arg0: i32) -> (i32, i32) {
    %c0_i32 = arith.constant 0 : i32
    %c0_i32_0 = arith.constant 0 : i32
    %c0_i32_1 = arith.constant 0 : i32
    return %c0_i32, %c0_i32_0 : i32, i32
  }
  func.func @transform_5(%arg0: i32) -> (i32, i32) {
    %c0_i32 = arith.constant 0 : i32
    %c0_i32_0 = arith.constant 0 : i32
    %c0_i32_1 = arith.constant 0 : i32
    return %c0_i32, %c0_i32_0 : i32, i32
  }
  func.func @transform_6(%arg0: i32) -> (i32, i32, i32) {
    %c0_i32 = arith.constant 0 : i32
    %c0_i32_0 = arith.constant 0 : i32
    %c0_i32_1 = arith.constant 0 : i32
    return %arg0, %c0_i32, %c0_i32_0 : i32, i32, i32
  }
}

</mosaic_0001>

<bundles_post_ra>
// kernel: gat_forward.1
= control target key start
LH: loop header
LB: loop body
LE: loop exit
PB: predicated region body
PF: predicated region fallthrough
CT: control target
= control target key end

     0   :  { %s846_s21 = smov 0   ;;  %s965_s0 = inlined_call_operand.vmem [shape: f32[4,32,16], index: 0, kind: input, shape index: {}]   ;;  %s966_s1 = inlined_call_operand.vmem [shape: f32[4,32,32], index: 1, kind: input, shape index: {}]   ;;  %s967_s2 = inlined_call_operand.vmem [shape: f32[16,32], index: 2, kind: input, shape index: {}]   ;;  %s968_s3 = inlined_call_operand.vmem [shape: f32[3,32], index: 3, kind: input, shape index: {}]   ;;  %s969_s4 = inlined_call_operand.vmem [shape: f32[32,8], index: 4, kind: input, shape index: {}]   ;;  %s970_s5 = inlined_call_operand.vmem [shape: f32[3,8], index: 5, kind: input, shape index: {}]   ;;  %s971_s6 = inlined_call_operand.vmem [shape: f32[4,32,8], index: 6, kind: output, shape index: {}]  }
   0x1 LB: > { %s726_s22 = sadd.s32 4294967295, %s808_s21   ;;  %p730_p0 = scmp.ge.s32.totalorder %s808_s21, 1  ;;  %s808_s21 = sphi %s846_s21, %s16_s21  }
   0x2   : > { %p222_p1 = scmp.lt.s32.totalorder %s808_s21, 5 }
   0x4   : > { %p223_p2 = pnand %p730_p0, %p222_p1 }
   0x5   : > { %p257_p3 = scmp.lt.s32.totalorder (!%p223_p2), %s726_s22, 3 }
   0x6   : > { %226 = sbr.rel (%p223_p2) target bundleno = 1430 (0x596), region = 44 }
   0xb   : > { %v289_v0 = vld [vmem:[%s967_s2] sm:$0xff]  ;;  %v290_v1 = vld [vmem:[%s967_s2 + $0x8] sm:$0xff]  ;;  %s973_s22 = smov (!%p257_p3, %s726_s22), 3  ;;  %vm295_vm0 = vcmask 130048   ;;  %vm321_vm1 = vcmask 261120   ;;  %vm507_vm10 = vcmask 64512  }
   0xc   : > { %v294_v2 = vpack.c.bf16 %v290_v1, %v289_v0  ;;  %s860_s27 = sshll.u32 %s973_s22, 5  ;;  %v869_v9 = vld [vmem:[%s968_s3] sm:$0x7]  ;;  %v810_v37 = vmov -1e+30  }
   0xd   : > { %s261_s30 = scalar_lea.vmem %s965_s0, %s860_s27  ;;  %v357_v10 = vperm.slane %v869_v9, 1  ;;  %s266_s11 = scalar_lea.vmem %s966_s1, %s860_s27 }
   0xe   : > { %309 = vmatpush.bf16.msra.mxu0 %v294_v2  ;;  %760 = vmatpush.bf16.msra.mxu1 %v294_v2  ;;  %v285_v3 = vld [vmem:[%s261_s30] sm:$0xff]  ;;  %v286_v4 = vld [vmem:[%s261_s30 + $0x8] sm:$0xff]  ;;  %v287_v5 = vld [vmem:[%s261_s30 + $0x10] sm:$0xff]  ;;  %s271_s25 = scalar_lea.vmem %s971_s6, %s860_s27 }
   0xf   : > { %v292_v6 = vpack.c.bf16 %v286_v4, %v285_v3  ;;  %v288_v7 = vld [vmem:[%s261_s30 + $0x18] sm:$0xff]  ;;  %v275_v28 = vld [vmem:[%s266_s11 + $0x10] sm:$0xff]  ;;  %v273_v30 = vld [vmem:[%s266_s11] sm:$0xff] }
  0x10   : > { %v293_v8 = vpack.c.bf16 %v288_v7, %v287_v5  ;;  %v276_v27 = vld [vmem:[%s266_s11 + $0x18] sm:$0xff]  ;;  %vm279_vm3 = vcmp.ne.f32.partialorder %v275_v28, 0.0  ;;  %vm277_vm4 = vcmp.ne.f32.partialorder %v273_v30, 0.0  ;;  %v274_v45 = vld [vmem:[%s266_s11 + $0x8] sm:$0xff] }
  0x11   : > { %737 = vmatmul.msk.bf16.vlgmr.msra.gmra.mxu0 %vm295_vm0, %v292_v6  ;;  %vm280_vm2 = vcmp.ne.f32.partialorder %v276_v27, 0.0  ;;  %v888_v39 = vsel %vm279_vm3, 0.0, %v810_v37  ;;  %v890_v43 = vsel %vm277_vm4, 0.0, %v810_v37  ;;  %vm278_vm8 = vcmp.ne.f32.partialorder %v274_v45, 0.0 }
  0x12   : > { %738 = vmatmul.msk.bf16.vlgmr.msra.gmra.mxu1 %vm295_vm0, %v293_v8  ;;  %v886_v38 = vsel %vm280_vm2, 0.0, %v810_v37  ;;  %v898_v56 = vsel %vm278_vm8, 0.0, %v810_v37 }
  0x8e   : > { %v311_v11 = vpop.f32.mrf.mxu0 }
  0x8f   : > { %v316_v12 = vpop.f32.mrf.mxu1  ;;  %v358_v13 = vmul.f32 %v357_v10, %v311_v11 }
  0x90   : > { %v360_v14 = vmul.f32 %v357_v10, %v316_v12 }
  0x91   : > { %v362_v15 = vsel %vm321_vm1, %v358_v13, 0.0 }
  0x92   : > { %v368_v16 = vsel %vm321_vm1, %v360_v14, 0.0  ;;  %363 = vadd.xlane.f32.xlu0 %v362_v15 }
  0x93   : > { %369 = vadd.xlane.f32.xlu1 %v368_v16 }
  0x96   : > { %v313_v17 = vpop.f32.mrf.mxu0 }
  0x97   : > { %v318_v18 = vpop.f32.mrf.mxu1  ;;  %v359_v19 = vmul.f32 %v357_v10, %v313_v17  ;;  %v441_v24 = vpack.c.bf16 %v313_v17, %v311_v11 }
  0x98   : > { %739 = vmatpush.xpose.msk.msrb.mxu1 %vm321_vm1, %v318_v18  ;;  %v442_v20 = vpack.c.bf16 %v318_v18, %v316_v12  ;;  %v361_v21 = vmul.f32 %v357_v10, %v318_v18 }
  0x99   : > { %v365_v22 = vsel %vm321_vm1, %v359_v19, 0.0 }
  0x9a   : > { %456 = vmatpush.bf16.msra.mxu2 %v442_v20  ;;  %v371_v23 = vsel %vm321_vm1, %v361_v21, 0.0  ;;  %366 = vadd.xlane.f32.xlu0 %v365_v22 }
  0x9b   : > { %372 = vadd.xlane.f32.xlu1 %v371_v23 }
  0x9c   : > { %740 = vmatpush.xpose.msk.msrb.mxu1 %vm321_vm1, %v316_v12 }
  0x9e   : > { %457 = vmatpush.bf16.msra.mxu2 %v441_v24 }
  0xa0   : > { %741 = vmatpush.xpose.msk.msrb.mxu1 %vm321_vm1, %v313_v17 }
  0xa4   : > { %742 = vmatpush.xpose.msk.msrb.mxu1 %vm321_vm1, %v311_v11 }
  0xa7   : > { %743 = vmatmul.msk.f32.vlgmr.msrb.gmra.mxu1 %vm321_vm1, %v869_v9 }
 0x105   : > { %v364_v26 = vpop.xlane.xlu0 %363 }
 0x106   : > { %v370_v25 = vpop.xlane.xlu1 %369 }
 0x10d   : > { %v367_v33 = vpop.xlane.xlu0 %366 }
 0x10e   : > { %v373_v32 = vpop.xlane.xlu1 %372 }
 0x124   : > { %v354_v29 = vpop.f32.mrf.mxu1 }
 0x125   : > { %v374_v31 = vperm.slane %v354_v29, 0 }
 0x127   : > { %v378_v34 = vadd.f32 %v374_v31, %v373_v32  ;;  %v377_v35 = vadd.f32 %v374_v31, %v370_v25  ;;  %v375_v36 = vadd.f32 %v374_v31, %v364_v26  ;;  %v376_v40 = vadd.f32 %v374_v31, %v367_v33  ;;  %v475_v31 = vld [vmem:[%s969_s4 + $0x10] sm:$0xff]  ;;  %v476_v32 = vld [vmem:[%s969_s4 + $0x18] sm:$0xff] }
 0x128   : > { %v481_v33 = vpack.c.bf16 %v476_v32, %v475_v31 }
 0x129   : > { %vm382_vm5 = vcmp.ge.f32.partialorder %v378_v34, 0.0  ;;  %v386_v41 = vmul.f32 0.2, %v378_v34  ;;  %vm381_vm6 = vcmp.ge.f32.partialorder %v377_v35, 0.0  ;;  %v385_v42 = vmul.f32 0.2, %v377_v35 }
 0x12a   : > { %vm379_vm7 = vcmp.ge.f32.partialorder %v375_v36, 0.0  ;;  %v383_v44 = vmul.f32 0.2, %v375_v36  ;;  %v384_v51 = vmul.f32 0.2, %v376_v40  ;;  %vm380_vm9 = vcmp.ge.f32.partialorder %v376_v40, 0.0  ;;  %494 = vmatpush.bf16.msra.mxu3 %v481_v33 }
 0x12b   : > { %v390_v46 = vsel %vm382_vm5, %v378_v34, %v386_v41  ;;  %v389_v47 = vsel %vm381_vm6, %v377_v35, %v385_v42  ;;  %v473_v34 = vld [vmem:[%s969_s4] sm:$0xff]  ;;  %v474_v35 = vld [vmem:[%s969_s4 + $0x8] sm:$0xff] }
 0x12c   : > { %v394_v48 = vadd.f32 %v390_v46, %v886_v38  ;;  %v393_v49 = vadd.f32 %v389_v47, %v888_v39  ;;  %v387_v50 = vsel %vm379_vm7, %v375_v36, %v383_v44  ;;  %v388_v57 = vsel %vm380_vm9, %v376_v40, %v384_v51 }
 0x12d   : > { %v391_v52 = vadd.f32 %v387_v50, %v890_v43  ;;  %v392_v58 = vadd.f32 %v388_v57, %v898_v56  ;;  %v480_v36 = vpack.c.bf16 %v474_v35, %v473_v34  ;;  %v443_v40 = vperm.slane %v869_v9, 2  ;;  %v926_v9 = vld [vmem:[%s970_s5] sm:$0x7] }
 0x12e   : > { %v404_v53 = vsel %vm321_vm1, %v394_v48, -inf  ;;  %v401_v54 = vsel %vm321_vm1, %v393_v49, -inf }
 0x12f   : > { %405 = vmax.xlane.f32.xlu1 %v404_v53  ;;  %402 = vmax.xlane.f32.xlu0 %v401_v54  ;;  %v395_v55 = vsel %vm321_vm1, %v391_v52, -inf  ;;  %v398_v59 = vsel %vm321_vm1, %v392_v58, -inf }
 0x130   : > { %396 = vmax.xlane.f32.xlu2 %v395_v55  ;;  %495 = vmatpush.bf16.msra.mxu3 %v480_v36  ;;  %v543_v55 = vperm.slane %v926_v9, 1 }
 0x138   : > { %399 = vmax.xlane.f32.xlu2 %v398_v59 }
 0x1a2   : > { %v403_v60 = vpop.xlane.xlu0 %402  ;;  %v406_v63 = vpop.xlane.xlu1 %405 }
 0x1a3   : > { %v409_v61 = vsub.f32 %v393_v49, %v403_v60  ;;  %v397_v62 = vpop.xlane.xlu2 %396  ;;  %v410_v3 = vsub.f32 %v394_v48, %v406_v63 }
 0x1a4   : > { %v407_v0 = vsub.f32 %v391_v52, %v397_v62 }
 0x1a5   : > { %v415_v1 = vmul.f32 1.442695, %v409_v61  ;;  %v417_v4 = vmul.f32 1.442695, %v410_v3 }
 0x1a6   : > { %v411_v2 = vmul.f32 1.442695, %v407_v0 }
 0x1a7   : > { %770 = vpow2.f32 %v415_v1 }
 0x1a8   : > { %772 = vpow2.f32 %v411_v2 }
 0x1a9   : > { %774 = vpow2.f32 %v417_v4 }
 0x1ab   : > { %v400_v5 = vpop.xlane.xlu2 %399 }
 0x1ac   : > { %v408_v6 = vsub.f32 %v392_v58, %v400_v5 }
 0x1ad   : > { %v771_v7 = vpop.eup %770 }
 0x1ae   : > { %v413_v8 = vmul.f32 1.442695, %v408_v6  ;;  %v773_v10 = vpop.eup %772  ;;  %v425_v11 = vsel %vm321_vm1, %v771_v7, 0.0 }
 0x1af   : > { %426 = vadd.xlane.f32.xlu1 %v425_v11  ;;  %v419_v12 = vsel %vm321_vm1, %v773_v10, 0.0  ;;  %v775_v13 = vpop.eup %774 }
 0x1b0   : > { %776 = vpow2.f32 %v413_v8  ;;  %420 = vadd.xlane.f32.xlu2 %v419_v12  ;;  %v428_v16 = vsel %vm321_vm1, %v775_v13, 0.0 }
 0x1b6   : > { %v777_v14 = vpop.eup %776 }
 0x1b7   : > { %v422_v15 = vsel %vm321_vm1, %v777_v14, 0.0 }
 0x1b8   : > { %423 = vadd.xlane.f32.xlu0 %v422_v15  ;;  %429 = vadd.xlane.f32.xlu2 %v428_v16 }
 0x222   : > { %v427_v25 = vpop.xlane.xlu1 %426 }
 0x223   : > { %v421_v17 = vpop.xlane.xlu2 %420 }
 0x224   : > { %778 = vrcp.f32 %v421_v17 }
 0x22a   : > { %v779_v19 = vpop.eup %778 }
 0x22b   : > { %v424_v18 = vpop.xlane.xlu0 %423  ;;  %v435_v21 = vmul.f32 %v779_v19, %v773_v10  ;;  %v430_v23 = vpop.xlane.xlu2 %429 }
 0x22c   : > { %780 = vrcp.f32 %v424_v18 }
 0x22d   : > { %782 = vrcp.f32 %v430_v23 }
 0x22e   : > { %784 = vrcp.f32 %v427_v25 }
 0x232   : > { %v781_v20 = vpop.eup %780 }
 0x233   : > { %v436_v22 = vmul.f32 %v781_v20, %v777_v14  ;;  %v783_v26 = vpop.eup %782 }
 0x234   : > { %v785_v27 = vpop.eup %784  ;;  %v438_v28 = vmul.f32 %v783_v26, %v775_v13 }
 0x235   : > { %v439_v24 = vpack.c.bf16 %v436_v22, %v435_v21  ;;  %v437_v29 = vmul.f32 %v785_v27, %v771_v7 }
 0x237   : > { %744 = vmatmul.msk.bf16.vlgmr.msra.gmra.mxu2 %vm321_vm1, %v439_v24  ;;  %v440_v30 = vpack.c.bf16 %v438_v28, %v437_v29 }
 0x247   : > { %745 = vmatmul.msk.bf16.gmra.mxu2 %vm321_vm1, %v440_v30 }
 0x2ba   : > { %v459_v37 = vpop.f32.mrf.mxu2 }
 0x2bb   : > { %v460_v41 = vadd.f32 %v459_v37, %v443_v40 }
 0x2bd   : > { %v469_v45 = vmax.f32 %v460_v41, 0.0 }
 0x2c2   : > { %v461_v42 = vpop.f32.mrf.mxu2 }
 0x2c3   : > { %v462_v44 = vadd.f32 %v461_v42, %v443_v40 }
 0x2c5   : > { %v470_v46 = vmax.f32 %v462_v44, 0.0 }
 0x2c7   : > { %v478_v47 = vpack.c.bf16 %v470_v46, %v469_v45 }
 0x2c9   : > { %746 = vmatmul.msk.bf16.vlgmr.msra.gmra.mxu3 %vm321_vm1, %v478_v47 }
 0x2ca   : > { %v464_v48 = vpop.f32.mrf.mxu2 }
 0x2cb   : > { %v465_v49 = vadd.f32 %v464_v48, %v443_v40 }
 0x2cd   : > { %v471_v52 = vmax.f32 %v465_v49, 0.0 }
 0x2d2   : > { %v466_v50 = vpop.f32.mrf.mxu2 }
 0x2d3   : > { %v467_v51 = vadd.f32 %v466_v50, %v443_v40 }
 0x2d5   : > { %v472_v53 = vmax.f32 %v467_v51, 0.0 }
 0x2d7   : > { %v479_v54 = vpack.c.bf16 %v472_v53, %v471_v52 }
 0x2d9   : > { %747 = vmatmul.msk.bf16.gmra.mxu3 %vm321_vm1, %v479_v54 }
 0x34c   : > { %v497_v57 = vpop.f32.mrf.mxu3 }
 0x34d   : > { %v544_v58 = vmul.f32 %v543_v55, %v497_v57 }
 0x34f   : > { %v548_v59 = vsel %vm507_vm10, %v544_v58, 0.0 }
 0x350   : > { %549 = vadd.xlane.f32.xlu0 %v548_v59 }
 0x354   : > { %v499_v60 = vpop.f32.mrf.mxu3 }
 0x355   : > { %v545_v61 = vmul.f32 %v543_v55, %v499_v60  ;;  %v627_v6 = vpack.c.bf16 %v499_v60, %v497_v57 }
 0x357   : > { %v551_v62 = vsel %vm507_vm10, %v545_v61, 0.0 }
 0x358   : > { %552 = vadd.xlane.f32.xlu1 %v551_v62 }
 0x35c   : > { %v502_v63 = vpop.f32.mrf.mxu3 }
 0x35d   : > { %v546_v0 = vmul.f32 %v543_v55, %v502_v63 }
 0x35f   : > { %v554_v1 = vsel %vm507_vm10, %v546_v0, 0.0 }
 0x360   : > { %555 = vadd.xlane.f32.xlu2 %v554_v1 }
 0x364   : > { %v504_v2 = vpop.f32.mrf.mxu3 }
 0x365   : > { %v547_v3 = vmul.f32 %v543_v55, %v504_v2  ;;  %748 = vmatpush.xpose.msk.msra.mxu1 %vm507_vm10, %v504_v2  ;;  %v628_v4 = vpack.c.bf16 %v504_v2, %v502_v63 }
 0x367   : > { %642 = vmatpush.bf16.msrb.mxu0 %v628_v4  ;;  %v557_v5 = vsel %vm507_vm10, %v547_v3, 0.0  ;;  %v629_v4 = vperm.slane %v926_v9, 2 }
 0x368   : > { %558 = vadd.xlane.f32.xlu0 %v557_v5 }
 0x369   : > { %749 = vmatpush.xpose.msk.msra.mxu1 %vm507_vm10, %v502_v63 }
 0x36b   : > { %643 = vmatpush.bf16.msrb.mxu0 %v627_v6 }
 0x36d   : > { %750 = vmatpush.xpose.msk.msra.mxu1 %vm507_vm10, %v499_v60 }
 0x371   : > { %751 = vmatpush.xpose.msk.msra.mxu1 %vm507_vm10, %v497_v57 }
 0x374   : > { %752 = vmatmul.msk.f32.vlgmr.msra.gmra.mxu1 %vm507_vm10, %v926_v9 }
 0x3c3   : > { %v550_v7 = vpop.xlane.xlu0 %549 }
 0x3cb   : > { %v553_v11 = vpop.xlane.xlu1 %552 }
 0x3d3   : > { %v556_v12 = vpop.xlane.xlu2 %555 }
 0x3db   : > { %v559_v13 = vpop.xlane.xlu0 %558 }
 0x3f1   : > { %v540_v8 = vpop.f32.mrf.mxu1 }
 0x3f2   : > { %v560_v10 = vperm.slane %v540_v8, 0 }
 0x3f4   : > { %v561_v14 = vadd.f32 %v560_v10, %v550_v7  ;;  %v562_v15 = vadd.f32 %v560_v10, %v553_v11  ;;  %v563_v16 = vadd.f32 %v560_v10, %v556_v12  ;;  %v564_v17 = vadd.f32 %v560_v10, %v559_v13 }
 0x3f6   : > { %vm567_vm11 = vcmp.ge.f32.partialorder %v563_v16, 0.0  ;;  %v571_v18 = vmul.f32 0.2, %v563_v16  ;;  %vm566_vm12 = vcmp.ge.f32.partialorder %v562_v15, 0.0  ;;  %v570_v19 = vmul.f32 0.2, %v562_v15 }
 0x3f7   : > { %vm565_vm13 = vcmp.ge.f32.partialorder %v561_v14, 0.0  ;;  %v569_v20 = vmul.f32 0.2, %v561_v14  ;;  %v572_v26 = vmul.f32 0.2, %v564_v17  ;;  %vm568_vm14 = vcmp.ge.f32.partialorder %v564_v17, 0.0 }
 0x3f8   : > { %v575_v21 = vsel %vm567_vm11, %v563_v16, %v571_v18  ;;  %v574_v22 = vsel %vm566_vm12, %v562_v15, %v570_v19 }
 0x3f9   : > { %v579_v23 = vadd.f32 %v575_v21, %v888_v39  ;;  %v578_v24 = vadd.f32 %v574_v22, %v898_v56  ;;  %v573_v25 = vsel %vm565_vm13, %v561_v14, %v569_v20  ;;  %v576_v31 = vsel %vm568_vm14, %v564_v17, %v572_v26 }
 0x3fa   : > { %v577_v27 = vadd.f32 %v573_v25, %v890_v43  ;;  %v580_v32 = vadd.f32 %v576_v31, %v886_v38 }
 0x3fb   : > { %v587_v28 = vsel %vm321_vm1, %v579_v23, -inf  ;;  %v584_v29 = vsel %vm321_vm1, %v578_v24, -inf }
 0x3fc   : > { %588 = vmax.xlane.f32.xlu0 %v587_v28  ;;  %585 = vmax.xlane.f32.xlu2 %v584_v29  ;;  %v581_v30 = vsel %vm321_vm1, %v577_v27, -inf  ;;  %v590_v39 = vsel %vm321_vm1, %v580_v32, -inf }
 0x3fd   : > { %582 = vmax.xlane.f32.xlu1 %v581_v30 }
 0x405   : > { %591 = vmax.xlane.f32.xlu1 %v590_v39 }
 0x46f   : > { %v589_v56 = vpop.xlane.xlu0 %588  ;;  %v586_v33 = vpop.xlane.xlu2 %585 }
 0x470   : > { %v595_v34 = vsub.f32 %v579_v23, %v589_v56  ;;  %v594_v43 = vsub.f32 %v578_v24, %v586_v33  ;;  %v583_v35 = vpop.xlane.xlu1 %582 }
 0x471   : > { %v593_v36 = vsub.f32 %v577_v27, %v583_v35 }
 0x472   : > { %v601_v37 = vmul.f32 1.442695, %v595_v34  ;;  %v599_v40 = vmul.f32 1.442695, %v594_v43 }
 0x473   : > { %v597_v41 = vmul.f32 1.442695, %v593_v36 }
 0x474   : > { %786 = vpow2.f32 %v601_v37 }
 0x475   : > { %788 = vpow2.f32 %v599_v40 }
 0x476   : > { %790 = vpow2.f32 %v597_v41 }
 0x478   : > { %v592_v42 = vpop.xlane.xlu1 %591 }
 0x479   : > { %v596_v44 = vsub.f32 %v580_v32, %v592_v42 }
 0x47a   : > { %v787_v45 = vpop.eup %786 }
 0x47b   : > { %v789_v46 = vpop.eup %788  ;;  %v603_v38 = vmul.f32 1.442695, %v596_v44  ;;  %v611_v47 = vsel %vm321_vm1, %v787_v45, 0.0 }
 0x47c   : > { %v791_v48 = vpop.eup %790  ;;  %v608_v49 = vsel %vm321_vm1, %v789_v46, 0.0  ;;  %612 = vadd.xlane.f32.xlu1 %v611_v47 }
 0x47d   : > { %792 = vpow2.f32 %v603_v38  ;;  %609 = vadd.xlane.f32.xlu0 %v608_v49  ;;  %v605_v50 = vsel %vm321_vm1, %v791_v48, 0.0 }
 0x47e   : > { %606 = vadd.xlane.f32.xlu2 %v605_v50 }
 0x483   : > { %v793_v51 = vpop.eup %792 }
 0x484   : > { %v614_v52 = vsel %vm321_vm1, %v793_v51, 0.0 }
 0x486   : > { %615 = vadd.xlane.f32.xlu2 %v614_v52 }
 0x4ef   : > { %v613_v62 = vpop.xlane.xlu1 %612 }
 0x4f0   : > { %v610_v53 = vpop.xlane.xlu0 %609 }
 0x4f1   : > { %794 = vrcp.f32 %v610_v53  ;;  %v607_v54 = vpop.xlane.xlu2 %606 }
 0x4f2   : > { %796 = vrcp.f32 %v607_v54 }
 0x4f7   : > { %v795_v55 = vpop.eup %794 }
 0x4f8   : > { %v797_v57 = vpop.eup %796  ;;  %v622_v58 = vmul.f32 %v795_v55, %v789_v46 }
 0x4f9   : > { %v621_v59 = vmul.f32 %v797_v57, %v791_v48  ;;  %v616_v60 = vpop.xlane.xlu2 %615 }
 0x4fa   : > { %798 = vrcp.f32 %v616_v60 }
 0x4fb   : > { %v625_v61 = vpack.c.bf16 %v622_v58, %v621_v59  ;;  %800 = vrcp.f32 %v613_v62 }
 0x4fd   : > { %753 = vmatmul.msk.bf16.vlgmr.msrb.gmra.mxu0 %vm321_vm1, %v625_v61 }
 0x500   : > { %v799_v63 = vpop.eup %798 }
 0x501   : > { %v801_v0 = vpop.eup %800  ;;  %v624_v1 = vmul.f32 %v799_v63, %v793_v51 }
 0x502   : > { %v623_v2 = vmul.f32 %v801_v0, %v787_v45 }
 0x504   : > { %v626_v3 = vpack.c.bf16 %v624_v1, %v623_v2 }
 0x50d   : > { %754 = vmatmul.msk.bf16.gmra.mxu0 %vm321_vm1, %v626_v3 }
 0x57a   : > { %v645_v5 = vpop.f32.mrf.mxu0 }
 0x57b   : > { %v646_v6 = vadd.f32 %v645_v5, %v629_v4 }
 0x57d   : > { %655 = vst.msk [vmem:[%s271_s25] sm:$0xff] %vm507_vm10, %v646_v6 }
 0x582   : > { %v647_v7 = vpop.f32.mrf.mxu0 }
 0x583   : > { %v648_v8 = vadd.f32 %v647_v7, %v629_v4 }
 0x585   : > { %656 = vst.msk [vmem:[%s271_s25 + $0x8] sm:$0xff] %vm507_vm10, %v648_v8 }
 0x58a   : > { %v650_v10 = vpop.f32.mrf.mxu0 }
 0x58b   : > { %v651_v11 = vadd.f32 %v650_v10, %v629_v4 }
 0x58d   : > { %657 = vst.msk [vmem:[%s271_s25 + $0x10] sm:$0xff] %vm507_vm10, %v651_v11 }
 0x592   : > { %v652_v12 = vpop.f32.mrf.mxu0 }
 0x593   : > { %v653_v13 = vadd.f32 %v652_v12, %v629_v4 }
 0x595   : > { %658 = vst.msk [vmem:[%s271_s25 + $0x18] sm:$0xff] %vm507_vm10, %v653_v13 }
 0x596 PF: > { %s16_s21 = sadd.s32 1, %s808_s21  }
 0x597   : > { %p13_p4 = scmp.ge.s32.totalorder %s16_s21, 6  }
 0x599   :  { %15 = sbr.rel (!%p13_p4) target bundleno = 1 (0x1), region = 77 }

</bundles_post_ra>
